<compile_context>
chip_gen: v7x
topology: tpu7x:2x2x1
jax: 0.10.0
libtpu: 0.0.40
codegen_flags: <defaults>
</compile_context>

<pallas_src>
import jax
import jax.numpy as jnp
from jax.experimental import pallas as pl
from jax.experimental.pallas import tpu as pltpu

_LANES = 128        # vreg lane width (last dim of every tile)
_SUBLANES = 8       # f32 sublane count — row tiles kept a multiple of 8
_MAX_TILE_ROWS = 512


def _round_up(n, m):
    return ((n + m - 1) // m) * m


def _scale_kernel(scale_ref, x_ref, o_ref):
    # scale_ref: (1, 1) f32 in SMEM.  x_ref / o_ref: (tm, 128) VMEM tiles.
    o_ref[...] = x_ref[...] * scale_ref[0, 0]


def scale_forward(x, scale):
    """Pallas equivalent of Scale.forward: x * scale (scale is a scalar)."""
    orig_shape = x.shape
    orig_dtype = x.dtype
    n = x.size

    # Lane-dense layout: flatten and view as (rows, 128).
    rows = pl.cdiv(n, _LANES)
    tm = min(_MAX_TILE_ROWS, _round_up(rows, _SUBLANES))
    rows_p = _round_up(rows, tm)

    flat = x.reshape(-1)
    pad = rows_p * _LANES - n
    if pad:
        flat = jnp.concatenate([flat, jnp.zeros((pad,), orig_dtype)])
    x2d = flat.reshape(rows_p, _LANES)

    scale_smem = jnp.asarray(scale, dtype=orig_dtype).reshape(1, 1)

    out2d = pl.pallas_call(
        _scale_kernel,
        out_shape=jax.ShapeDtypeStruct((rows_p, _LANES), orig_dtype),
        grid=(rows_p // tm,),
        in_specs=[
            # Scalar parameter: whole (1,1) array resident in SMEM.
            pl.BlockSpec(memory_space=pltpu.MemorySpace.SMEM),
            # Input: (tm, 128) row tile, auto double-buffered.
            pl.BlockSpec((tm, _LANES), lambda i: (i, 0)),
        ],
        out_specs=pl.BlockSpec((tm, _LANES), lambda i: (i, 0)),
        compiler_params=pltpu.CompilerParams(
            dimension_semantics=("parallel",)),
    )(scale_smem, x2d)

    return out2d.reshape(-1)[:n].reshape(orig_shape)


if __name__ == "__main__":
    key = jax.random.PRNGKey(0)
    kx, ks = jax.random.split(key, 2)

    # NCHW input like the PyTorch caller would pass (batch=2, C=4, 16x16).
    x = jax.random.normal(kx, (2, 4, 16, 16), jnp.float32)

    # nn.Parameter(torch.FloatTensor([init_value])) with init_value=1.0,
    # plus a second "trained" value so the multiply is actually exercised.
    scale_init = jnp.array([1.0], jnp.float32)
    scale_trained = jnp.array([0.5], jnp.float32) + jax.random.uniform(ks, (1,))

    fwd = jax.jit(scale_forward)

    out_init = jax.block_until_ready(fwd(x, scale_init))
    out_trained = jax.block_until_ready(fwd(x, scale_trained))

    assert out_init.shape == x.shape and out_init.dtype == x.dtype
    assert jnp.allclose(out_init, x * scale_init[0], rtol=1e-6, atol=1e-6)
    assert jnp.allclose(out_trained, x * scale_trained[0], rtol=1e-6, atol=1e-6)

    print("KERNEL_OK")
</pallas_src>

<mosaic_0001>
module attributes {stable_mosaic.version = 11 : i64} {
  func.func @_scale_kernel(%arg0: i32, %arg1: memref<1x1xf32, #tpu.memory_space<smem>>, %arg2: memref<16x128xf32, #tpu.memory_space<vmem>>, %arg3: memref<16x128xf32, #tpu.memory_space<vmem>>) attributes {dimension_semantics = [#tpu.dimension_semantics<parallel>], iteration_bounds = array<i64: 1>, scalar_prefetch = 0 : i64, scratch_operands = 0 : i64, tpu.core_type = #tpu.core_type<tc>, window_params = [{transform_indices = @transform_0, window_bounds = array<i64: 1, 1>}, {transform_indices = @transform_1, window_bounds = array<i64: 16, 128>}, {transform_indices = @transform_2, window_bounds = array<i64: 16, 128>}]} {
    %c0 = arith.constant 0 : index
    %c0_0 = arith.constant 0 : index
    %0 = vector.load %arg2[%c0, %c0_0] : memref<16x128xf32, #tpu.memory_space<vmem>>, vector<16x128xf32>
    %c0_1 = arith.constant 0 : index
    %c0_2 = arith.constant 0 : index
    %1 = memref.load %arg1[%c0_1, %c0_2] : memref<1x1xf32, #tpu.memory_space<smem>>
    %2 = vector.broadcast %1 : f32 to vector<16x128xf32>
    %3 = arith.mulf %0, %2 : vector<16x128xf32>
    %c0_3 = arith.constant 0 : index
    %c0_4 = arith.constant 0 : index
    %4 = vector.load %arg3[%c0_3, %c0_4] : memref<16x128xf32, #tpu.memory_space<vmem>>, vector<16x128xf32>
    tpu.vector_store %arg3[%c0_3, %c0_4], %3 {strides = array<i32>} : memref<16x128xf32, #tpu.memory_space<vmem>>, vector<16x128xf32>,
    return
  }
  func.func @transform_0(%arg0: i32) -> (i32, i32) {
    %c0_i32 = arith.constant 0 : i32
    %c0_i32_0 = arith.constant 0 : i32
    %c0_i32_1 = arith.constant 0 : i32
    return %c0_i32, %c0_i32_0 : i32, i32
  }
  func.func @transform_1(%arg0: i32) -> (i32, i32) {
    %c0_i32 = arith.constant 0 : i32
    %c0_i32_0 = arith.constant 0 : i32
    return %arg0, %c0_i32 : i32, i32
  }
  func.func @transform_2(%arg0: i32) -> (i32, i32) {
    %c0_i32 = arith.constant 0 : i32
    %c0_i32_0 = arith.constant 0 : i32
    return %arg0, %c0_i32 : i32, i32
  }
}

</mosaic_0001>

<bundles_post_ra>
// kernel: scale_forward.1
= control target key start
LH: loop header
LB: loop body
LE: loop exit
PB: predicated region body
PF: predicated region fallthrough
CT: control target
= control target key end

     0   :  { %s54_s0 = inlined_call_operand.<no memory space> [shape: f32[1,1], index: 0, kind: input, shape index: {}]   ;;  %s55_s1 = inlined_call_operand.vmem [shape: f32[16,128], index: 1, kind: input, shape index: {}]   ;;  %s56_s2 = inlined_call_operand.vmem [shape: f32[16,128], index: 2, kind: output, shape index: {}]  }
   0x1   :  { %v12_v0 = vld [vmem:[%s55_s1] sm:$0xff]  ;;  %v15_v1 = vstv %s54_s0  ;;  %v13_v2 = vld [vmem:[%s55_s1 + $0x8] sm:$0xff] }
   0x2   :  { %v16_v3 = vmul.f32 %v15_v1, %v12_v0  ;;  %v17_v4 = vmul.f32 %v15_v1, %v13_v2 }
   0x4   :  { %18 = vst [vmem:[%s56_s2] sm:$0xff] %v16_v3  ;;  %19 = vst [vmem:[%s56_s2 + $0x8] sm:$0xff] %v17_v4 }

</bundles_post_ra>
